<compile_context>
chip_gen: v5e
topology: v5e:2x2
jax: 0.10.0
libtpu: 0.0.40
codegen_flags: <defaults>
</compile_context>

<pallas_src>
import functools

import jax
import jax.numpy as jnp
from jax.experimental import pallas as pl
from jax.experimental.pallas import tpu as pltpu


_SQRT_HALF = 0.7071067811865476


def _gelu(x, approximate):
    if approximate:
        return jax.nn.gelu(x, approximate=True)        # tanh form -> EUP slot
    # PyTorch F.gelu default: exact (erf) formulation.
    return 0.5 * x * (1.0 + jax.lax.erf(x * _SQRT_HALF))


def ffn_geglu_kernel(x_ref, wv_ref, bv_ref, wg_ref, bg_ref, w2_ref, b2_ref,
                     o_ref, acc_ref, *, approximate_gelu):
    """One (token-tile, hidden-chunk) step of Linear -> GEGLU -> Linear."""
    j = pl.program_id(1)

    @pl.when(j == 0)
    def _init():
        acc_ref[...] = jnp.zeros_like(acc_ref)

    x = x_ref[...]                                      # native dtype -> MXU

    # gates first, run GELU, then values: at most two (tm, th) f32 live.
    gates = jnp.dot(x, wg_ref[...], preferred_element_type=jnp.float32)
    gates = _gelu(gates + bg_ref[...].astype(jnp.float32), approximate_gelu)
    vals = jnp.dot(x, wv_ref[...], preferred_element_type=jnp.float32)
    vals = vals + bv_ref[...].astype(jnp.float32)
    act = (gates * vals).astype(w2_ref.dtype)           # (tm, th)

    acc_ref[...] += jnp.dot(act, w2_ref[...], preferred_element_type=jnp.float32)

    @pl.when(j == pl.num_programs(1) - 1)
    def _finalize():
        out = acc_ref[...] + b2_ref[...].astype(jnp.float32)
        o_ref[...] = out.astype(o_ref.dtype)


def prepare_ffn_params(w1, b1, w2, b2):
    """One-time parameter preprocessing (hoisted out of the per-call path).

    w1: (dim, 2*hidden), b1: (2*hidden,) -- x @ W convention (torch W1.T)
    w2: (hidden, dim),   b2: (dim,)
    """
    dim, two_hidden = w1.shape
    hidden = two_hidden // 2
    assert w2.shape == (hidden, dim), "w2 must be (hidden, dim)"
    return dict(
        w_vals=w1[:, :hidden],
        w_gates=w1[:, hidden:],
        b_vals=b1[:hidden].reshape(1, hidden),
        b_gates=b1[hidden:].reshape(1, hidden),
        w2=w2,
        b2=b2.reshape(1, dim),
    )


def _vmem_cap_bytes():
    phys = 64 << 20                 # conservative default: v7x per-TC VMEM
    try:
        phys = int(getattr(pltpu.get_tpu_info(), "vmem_capacity_bytes", phys))
    except Exception:
        pass
    # ~20% headroom for Mosaic internal scratch / pipelining state:
    # ~51 MiB of 64 on v7x, ~102 MiB of 128 on v5e / v6e.
    return int(phys * 0.8)


def _vmem_usage_bytes(tm, th, dim, x_isz, w_isz):
    # Pallas double-buffers every BlockSpec'd operand by default (even the
    # constant-index weights), so count the weight / bias tiles twice.
    w_tiles = 2 * (3 * dim * th + 2 * th + dim) * w_isz
    x_tiles = 2 * tm * dim * x_isz
    o_tiles = 2 * tm * dim * x_isz
    acc = tm * dim * 4
    interm = 3 * tm * th * 4 + tm * th * w_isz          # gates/vals f32 + act
    return w_tiles + x_tiles + o_tiles + acc + interm


def _choose_tiles(M, dim, hidden, x_dtype, w_dtype, tm_default):
    x_isz = jnp.dtype(x_dtype).itemsize
    w_isz = jnp.dtype(w_dtype).itemsize
    cap = _vmem_cap_bytes()

    # Token tile: sublane-aligned 256 for long sequences (fills the 256x256 MXU
    # on v6e/v7x, amortizes per-grid-step overhead, and gives the megacore
    # "parallel" axis >= 2 steps); tm == M for small inputs, which is always
    # layout-legal (block dim == full array dim).
    sub = max(8, 32 // x_isz)                  # 8 f32, 16 bf16, 32 int8/fp8
    tm = max(sub, (tm_default // sub) * sub) if M > tm_default else M

    # Hidden chunk: prefer fully weight-resident (th == hidden); otherwise the
    # largest 128-aligned divisor of hidden whose working set fits the cap.
    th = hidden
    if _vmem_usage_bytes(tm, th, dim, x_isz, w_isz) > cap and hidden % 128 == 0:
        q = hidden // 128
        th = 128
        for nj in range(2, q + 1):
            if q % nj:
                continue
            cand = hidden // nj
            if _vmem_usage_bytes(tm, cand, dim, x_isz, w_isz) <= cap:
                th = cand
                break
    # Last resort for very large dim: shrink the token tile.
    while (_vmem_usage_bytes(tm, th, dim, x_isz, w_isz) > cap
           and M > tm and tm > 64):
        tm = max(64, ((tm // 2) // sub) * sub)

    usage = _vmem_usage_bytes(tm, th, dim, x_isz, w_isz)
    vmem_limit = int(min(max(usage + (4 << 20), 32 << 20), cap))
    return tm, th, vmem_limit


def feed_forward(x, params, *, tm=256, approximate_gelu=False):
    """x: [..., dim] -> [..., dim] via Linear(dim, 2h) -> GEGLU -> Linear(h, dim).

    The PyTorch module's Dropout layers are identity here (eval / p == 0.0).
    """
    w_vals, w_gates = params["w_vals"], params["w_gates"]
    b_vals, b_gates = params["b_vals"], params["b_gates"]
    w2, b2 = params["w2"], params["b2"]

    dim = x.shape[-1]
    hidden = w2.shape[0]
    assert w_vals.shape == (dim, hidden) and w2.shape == (hidden, dim)

    M = 1
    for s in x.shape[:-1]:
        M *= s
    x2d = x.reshape(M, dim)

    tm, th, vmem_limit = _choose_tiles(M, dim, hidden, x.dtype, w2.dtype, tm)
    nm = pl.cdiv(M, tm)        # partial last token block handled by Pallas
    nj = hidden // th          # th divides hidden by construction

    # Advisory cost hint so XLA schedules surrounding ops around the kernel.
    x_isz = jnp.dtype(x.dtype).itemsize
    w_isz = jnp.dtype(w2.dtype).itemsize
    flops = 6 * M * dim * hidden
    bytes_accessed = (2 * M * dim * x_isz
                      + (3 * dim * hidden + 2 * hidden + dim) * w_isz
                      * (nm if nj > 1 else 1))
    cost = pl.CostEstimate(flops=flops, transcendentals=M * hidden,
                           bytes_accessed=int(bytes_accessed))

    kernel = functools.partial(ffn_geglu_kernel, approximate_gelu=approximate_gelu)

    out2d = pl.pallas_call(
        kernel,
        out_shape=jax.ShapeDtypeStruct((M, dim), x.dtype),
        grid_spec=pltpu.PrefetchScalarGridSpec(
            num_scalar_prefetch=0,
            grid=(nm, nj),
            in_specs=[
                pl.BlockSpec((tm, dim), lambda i, j: (i, 0)),   # x token tile
                pl.BlockSpec((dim, th), lambda i, j: (0, j)),   # W1 "values" chunk
                pl.BlockSpec((1, th), lambda i, j: (0, j)),     # b1 values chunk
                pl.BlockSpec((dim, th), lambda i, j: (0, j)),   # W1 "gates" chunk
                pl.BlockSpec((1, th), lambda i, j: (0, j)),     # b1 gates chunk
                pl.BlockSpec((th, dim), lambda i, j: (j, 0)),   # W2 chunk
                pl.BlockSpec((1, dim), lambda i, j: (0, 0)),    # b2
            ],
            out_specs=pl.BlockSpec((tm, dim), lambda i, j: (i, 0)),
            scratch_shapes=[pltpu.VMEM((tm, dim), jnp.float32)],  # f32 accumulator
        ),
        compiler_params=pltpu.CompilerParams(
            # Token axis shards across TensorCores (v7x megacore); hidden axis
            # is a reduction into the accumulator -> "arbitrary", and last.
            dimension_semantics=("parallel", "arbitrary"),
            vmem_limit_bytes=vmem_limit,
        ),
        cost_estimate=cost,
    )(x2d, w_vals, b_vals, w_gates, b_gates, w2, b2)

    return out2d.reshape(x.shape)


def feed_forward_ref(x, w1, b1, w2, b2):
    h = jnp.einsum("...d,dh->...h", x, w1) + b1
    hidden = w2.shape[0]
    vals, gates = h[..., :hidden], h[..., hidden:]
    act = 0.5 * gates * (1.0 + jax.lax.erf(gates * _SQRT_HALF)) * vals
    return jnp.einsum("...h,hd->...d", act, w2) + b2


if __name__ == "__main__":
    key = jax.random.PRNGKey(0)
    dim, hidden = 32, 64
    k_x, k_w1, k_b1, k_w2, k_b2 = jax.random.split(key, 5)

    # nn.Linear(dim, 2*hidden) / nn.Linear(hidden, dim) parameters, stored as
    # (in, out) for the x @ W convention (i.e. torch weight transposed).
    w1 = jax.random.normal(k_w1, (dim, 2 * hidden), jnp.float32) * (1.0 / jnp.sqrt(dim))
    b1 = jax.random.normal(k_b1, (2 * hidden,), jnp.float32) * 0.01
    w2 = jax.random.normal(k_w2, (hidden, dim), jnp.float32) * (1.0 / jnp.sqrt(hidden))
    b2 = jax.random.normal(k_b2, (dim,), jnp.float32) * 0.01

    params = prepare_ffn_params(w1, b1, w2, b2)   # one-time preprocessing

    # Case 1: small shape, single full token tile.
    x = jax.random.normal(k_x, (2, 8, dim), jnp.float32)
    out = jax.block_until_ready(feed_forward(x, params))
    ref = feed_forward_ref(x, w1, b1, w2, b2)
    assert out.shape == x.shape
    assert jnp.allclose(out, ref, atol=1e-4, rtol=1e-4), "mismatch vs reference (case 1)"

    # Case 2: token count not a multiple of 8 -> tm == M (no pad, no slice).
    x2 = jax.random.normal(jax.random.PRNGKey(1), (2, 7, dim), jnp.float32)
    out2 = jax.block_until_ready(feed_forward(x2, params))
    ref2 = feed_forward_ref(x2, w1, b1, w2, b2)
    assert out2.shape == x2.shape
    assert jnp.allclose(out2, ref2, atol=1e-4, rtol=1e-4), "mismatch vs reference (case 2)"

    # Case 3: token count above the 256 tile and not divisible by it ->
    # multi-step "parallel" axis with a Pallas-masked partial last block.
    x3 = jax.random.normal(jax.random.PRNGKey(2), (2, 192, dim), jnp.float32)
    out3 = jax.block_until_ready(feed_forward(x3, params))
    ref3 = feed_forward_ref(x3, w1, b1, w2, b2)
    assert out3.shape == x3.shape
    assert jnp.allclose(out3, ref3, atol=1e-4, rtol=1e-4), "mismatch vs reference (case 3)"

    print("KERNEL_OK")
</pallas_src>

<mosaic_0001>
module attributes {stable_mosaic.version = 11 : i64} {
  func.func @ffn_geglu_kernel(%arg0: i32, %arg1: i32, %arg2: memref<16x32xf32, #tpu.memory_space<vmem>>, %arg3: memref<32x64xf32, #tpu.memory_space<vmem>>, %arg4: memref<1x64xf32, #tpu.memory_space<vmem>>, %arg5: memref<32x64xf32, #tpu.memory_space<vmem>>, %arg6: memref<1x64xf32, #tpu.memory_space<vmem>>, %arg7: memref<64x32xf32, #tpu.memory_space<vmem>>, %arg8: memref<1x32xf32, #tpu.memory_space<vmem>>, %arg9: memref<16x32xf32, #tpu.memory_space<vmem>>, %arg10: memref<16x32xf32, #tpu.memory_space<vmem>>) attributes {dimension_semantics = [#tpu.dimension_semantics<parallel>, #tpu.dimension_semantics<arbitrary>], iteration_bounds = array<i64: 1, 1>, scalar_prefetch = 0 : i64, scratch_operands = 1 : i64, tpu.core_type = #tpu.core_type<tc>, window_params = [{transform_indices = @transform_0, window_bounds = array<i64: 16, 32>}, {transform_indices = @transform_1, window_bounds = array<i64: 32, 64>}, {transform_indices = @transform_2, window_bounds = array<i64: 1, 64>}, {transform_indices = @transform_3, window_bounds = array<i64: 32, 64>}, {transform_indices = @transform_4, window_bounds = array<i64: 1, 64>}, {transform_indices = @transform_5, window_bounds = array<i64: 64, 32>}, {pipeline_mode = #tpu.pipeline_mode<synchronous>, transform_indices = @transform_6, window_bounds = array<i64: 1, 32>}, {transform_indices = @transform_7, window_bounds = array<i64: 16, 32>}]} {
    %c0_i32 = arith.constant 0 : i32
    %0 = arith.cmpi eq, %arg1, %c0_i32 : i32
    %1 = arith.extui %0 : i1 to i32
    %c0_i32_0 = arith.constant 0 : i32
    %2 = arith.cmpi ne, %1, %c0_i32_0 : i32
    scf.if %2 {
      %cst_23 = arith.constant 0.000000e+00 : f32
      %31 = vector.broadcast %cst_23 : f32 to vector<16x32xf32>
      %c0_24 = arith.constant 0 : index
      %c0_25 = arith.constant 0 : index
      %32 = vector.load %arg10[%c0_24, %c0_25] : memref<16x32xf32, #tpu.memory_space<vmem>>, vector<16x32xf32>
      tpu.vector_store %arg10[%c0_24, %c0_25], %31 {strides = array<i32>} : memref<16x32xf32, #tpu.memory_space<vmem>>, vector<16x32xf32>,
    } else {
    }
    %c0 = arith.constant 0 : index
    %c0_1 = arith.constant 0 : index
    %3 = vector.load %arg2[%c0, %c0_1] : memref<16x32xf32, #tpu.memory_space<vmem>>, vector<16x32xf32>
    %c0_2 = arith.constant 0 : index
    %c0_3 = arith.constant 0 : index
    %4 = vector.load %arg5[%c0_2, %c0_3] : memref<32x64xf32, #tpu.memory_space<vmem>>, vector<32x64xf32>
    %cst = arith.constant dense<0.000000e+00> : vector<16x64xf32>
    %5 = tpu.matmul %3, %4, %cst {dimension_numbers = #tpu.dot_dimension_numbers<[1], [0], [0], [1], [0, 0, 1, 1], [], []>} : vector<16x32xf32>, vector<32x64xf32>, vector<16x64xf32> -> vector<16x64xf32>
    %c0_4 = arith.constant 0 : index
    %c0_5 = arith.constant 0 : index
    %6 = vector.load %arg6[%c0_4, %c0_5] : memref<1x64xf32, #tpu.memory_space<vmem>>, vector<1x64xf32>
    %7 = vector.broadcast %6 : vector<1x64xf32> to vector<16x64xf32>
    %8 = arith.addf %5, %7 : vector<16x64xf32>
    %cst_6 = arith.constant 5.000000e-01 : f32
    %9 = vector.broadcast %cst_6 : f32 to vector<16x64xf32>
    %10 = arith.mulf %9, %8 : vector<16x64xf32>
    %cst_7 = arith.constant 0.707106769 : f32
    %11 = vector.broadcast %cst_7 : f32 to vector<16x64xf32>
    %12 = arith.mulf %8, %11 : vector<16x64xf32>
    %13 = math.erf %12 : vector<16x64xf32>
    %cst_8 = arith.constant 1.000000e+00 : f32
    %14 = vector.broadcast %cst_8 : f32 to vector<16x64xf32>
    %15 = arith.addf %14, %13 : vector<16x64xf32>
    %16 = arith.mulf %10, %15 : vector<16x64xf32>
    %c0_9 = arith.constant 0 : index
    %c0_10 = arith.constant 0 : index
    %17 = vector.load %arg3[%c0_9, %c0_10] : memref<32x64xf32, #tpu.memory_space<vmem>>, vector<32x64xf32>
    %cst_11 = arith.constant dense<0.000000e+00> : vector<16x64xf32>
    %18 = tpu.matmul %3, %17, %cst_11 {dimension_numbers = #tpu.dot_dimension_numbers<[1], [0], [0], [1], [0, 0, 1, 1], [], []>} : vector<16x32xf32>, vector<32x64xf32>, vector<16x64xf32> -> vector<16x64xf32>
    %c0_12 = arith.constant 0 : index
    %c0_13 = arith.constant 0 : index
    %19 = vector.load %arg4[%c0_12, %c0_13] : memref<1x64xf32, #tpu.memory_space<vmem>>, vector<1x64xf32>
    %20 = vector.broadcast %19 : vector<1x64xf32> to vector<16x64xf32>
    %21 = arith.addf %18, %20 : vector<16x64xf32>
    %22 = arith.mulf %16, %21 : vector<16x64xf32>
    %c0_14 = arith.constant 0 : index
    %c0_15 = arith.constant 0 : index
    %23 = vector.load %arg10[%c0_14, %c0_15] : memref<16x32xf32, #tpu.memory_space<vmem>>, vector<16x32xf32>
    %c0_16 = arith.constant 0 : index
    %c0_17 = arith.constant 0 : index
    %24 = vector.load %arg7[%c0_16, %c0_17] : memref<64x32xf32, #tpu.memory_space<vmem>>, vector<64x32xf32>
    %cst_18 = arith.constant dense<0.000000e+00> : vector<16x32xf32>
    %25 = tpu.matmul %22, %24, %cst_18 {dimension_numbers = #tpu.dot_dimension_numbers<[1], [0], [0], [1], [0, 0, 1, 1], [], []>} : vector<16x64xf32>, vector<64x32xf32>, vector<16x32xf32> -> vector<16x32xf32>
    %26 = arith.addf %23, %25 : vector<16x32xf32>
    %c0_19 = arith.constant 0 : index
    %c0_20 = arith.constant 0 : index
    %27 = vector.load %arg10[%c0_19, %c0_20] : memref<16x32xf32, #tpu.memory_space<vmem>>, vector<16x32xf32>
    tpu.vector_store %arg10[%c0_19, %c0_20], %26 {strides = array<i32>} : memref<16x32xf32, #tpu.memory_space<vmem>>, vector<16x32xf32>,
    %c0_i32_21 = arith.constant 0 : i32
    %28 = arith.cmpi eq, %arg1, %c0_i32_21 : i32
    %29 = arith.extui %28 : i1 to i32
    %c0_i32_22 = arith.constant 0 : i32
    %30 = arith.cmpi ne, %29, %c0_i32_22 : i32
    scf.if %30 {
      %c0_23 = arith.constant 0 : index
      %c0_24 = arith.constant 0 : index
      %31 = vector.load %arg10[%c0_23, %c0_24] : memref<16x32xf32, #tpu.memory_space<vmem>>, vector<16x32xf32>
      %c0_25 = arith.constant 0 : index
      %c0_26 = arith.constant 0 : index
      %32 = vector.load %arg8[%c0_25, %c0_26] : memref<1x32xf32, #tpu.memory_space<vmem>>, vector<1x32xf32>
      %33 = vector.broadcast %32 : vector<1x32xf32> to vector<16x32xf32>
      %34 = arith.addf %31, %33 : vector<16x32xf32>
      %c0_27 = arith.constant 0 : index
      %c0_28 = arith.constant 0 : index
      %35 = vector.load %arg9[%c0_27, %c0_28] : memref<16x32xf32, #tpu.memory_space<vmem>>, vector<16x32xf32>
      tpu.vector_store %arg9[%c0_27, %c0_28], %34 {strides = array<i32>} : memref<16x32xf32, #tpu.memory_space<vmem>>, vector<16x32xf32>,
    } else {
    }
    return
  }
  func.func @transform_0(%arg0: i32, %arg1: i32) -> (i32, i32) {
    %c0_i32 = arith.constant 0 : i32
    %c0_i32_0 = arith.constant 0 : i32
    return %arg0, %c0_i32 : i32, i32
  }
  func.func @transform_1(%arg0: i32, %arg1: i32) -> (i32, i32) {
    %c0_i32 = arith.constant 0 : i32
    %c0_i32_0 = arith.constant 0 : i32
    return %c0_i32, %arg1 : i32, i32
  }
  func.func @transform_2(%arg0: i32, %arg1: i32) -> (i32, i32) {
    %c0_i32 = arith.constant 0 : i32
    %c0_i32_0 = arith.constant 0 : i32
    return %c0_i32, %arg1 : i32, i32
  }
  func.func @transform_3(%arg0: i32, %arg1: i32) -> (i32, i32) {
    %c0_i32 = arith.constant 0 : i32
    %c0_i32_0 = arith.constant 0 : i32
    return %c0_i32, %arg1 : i32, i32
  }
  func.func @transform_4(%arg0: i32, %arg1: i32) -> (i32, i32) {
    %c0_i32 = arith.constant 0 : i32
    %c0_i32_0 = arith.constant 0 : i32
    return %c0_i32, %arg1 : i32, i32
  }
  func.func @transform_5(%arg0: i32, %arg1: i32) -> (i32, i32) {
    %c0_i32 = arith.constant 0 : i32
    %c0_i32_0 = arith.constant 0 : i32
    return %arg1, %c0_i32 : i32, i32
  }
  func.func @transform_6(%arg0: i32, %arg1: i32) -> (i32, i32) {
    %c0_i32 = arith.constant 0 : i32
    %c0_i32_0 = arith.constant 0 : i32
    %c0_i32_1 = arith.constant 0 : i32
    return %c0_i32, %c0_i32_0 : i32, i32
  }
  func.func @transform_7(%arg0: i32, %arg1: i32) -> (i32, i32) {
    %c0_i32 = arith.constant 0 : i32
    %c0_i32_0 = arith.constant 0 : i32
    return %arg0, %c0_i32 : i32, i32
  }
}

</mosaic_0001>

<bundles_post_ra>
// kernel: tpu_custom_call.1
= control target key start
LH: loop header
LB: loop body
LE: loop exit
PB: predicated region body
PF: predicated region fallthrough
CT: control target
= control target key end

     0   :  { %s485_s0 = inlined_call_operand.vmem [shape: f32[16,32], index: 0, kind: input, shape index: {}]   ;;  %s486_s1 = inlined_call_operand.vmem [shape: f32[32,64], index: 1, kind: input, shape index: {}]   ;;  %s487_s2 = inlined_call_operand.vmem [shape: f32[1,64], index: 2, kind: input, shape index: {}]   ;;  %s488_s3 = inlined_call_operand.vmem [shape: f32[32,64], index: 3, kind: input, shape index: {}]   ;;  %s489_s4 = inlined_call_operand.vmem [shape: f32[1,64], index: 4, kind: input, shape index: {}]   ;;  %s490_s5 = inlined_call_operand.vmem [shape: f32[64,32], index: 5, kind: input, shape index: {}]   ;;  %s491_s6 = inlined_call_operand.vmem [shape: f32[1,32], index: 6, kind: input, shape index: {}]   ;;  %s492_s7 = inlined_call_operand.hbm [shape: f32[16,32], index: 7, kind: output, shape index: {}]  }
   0x1   :  { %v39_v0 = vld [vmem:[%s488_s3 + $0x18] sm:$0xff]  ;;  %v38_v1 = vld [vmem:[%s488_s3 + $0x10] sm:$0xff]  ;;  %v37_v2 = vld [vmem:[%s488_s3 + $0x8] sm:$0xff] }
   0x2   :  { %63 = vmatpush.msra.mxu0 %v39_v0  ;;  %v165_v3 = vld [vmem:[%s486_s1 + $0x18] sm:$0xff]  ;;  %v164_v4 = vld [vmem:[%s486_s1 + $0x10] sm:$0xff]  ;;  %v36_v5 = vld [vmem:[%s488_s3] sm:$0xff] }
   0x3   :  { %182 = vmatpush.msra.mxu1 %v165_v3  ;;  %v163_v6 = vld [vmem:[%s486_s1 + $0x8] sm:$0xff] }
   0x4   :  { %64 = vmatpush.msra.mxu0 %v38_v1 }
   0x5   :  { %12 = vsyncpa [#allocation4], 0  ;;  %vm31_vm0 = vcmask 261120   ;;  %v34_v7 = vld [vmem:[%s485_s0] sm:$0xff]  ;;  %183 = vmatpush.msra.mxu1 %v164_v4  ;;  %v35_v9 = vld [vmem:[%s485_s0 + $0x8] sm:$0xff]  ;;  %v323_v62 = vmov 0.0  }
   0x6   :  { %65 = vmatpush.msra.mxu0 %v37_v2  ;;  %v162_v8 = vld [vmem:[%s486_s1] sm:$0xff]  ;;  %v204_v20 = vld [vmem:[%s490_s5 + $0x38] sm:$0xff]  ;;  %v203_v24 = vld [vmem:[%s490_s5 + $0x30] sm:$0xff]  ;;  %32 = vst.msk [vmem:[#allocation2] sm:$0xff] %vm31_vm0, %v323_v62  ;;  %vm205_vm9 = vcmask 523264   ;;  %s324_s14 = smov [#allocation3]  }
   0x7   :  { %184 = vmatpush.msra.mxu1 %v163_v6  ;;  %v290_v10 = vld [vmem:[%s489_s4] ss:$0 sm:$0xff]  ;;  %220 = vmatpush.msra.mxu2 %v204_v20  ;;  %v202_v28 = vld [vmem:[%s490_s5 + $0x28] sm:$0xff]  ;;  %v200_v36 = vld [vmem:[%s490_s5 + $0x18] sm:$0xff]  ;;  %33 = vst.msk [vmem:[#allocation2 + $0x8] sm:$0xff] %vm31_vm0, %v323_v62  ;;  %s256_s15 = sshll.u32 %s324_s14, 4  ;;  %s257_s15 = int_to_ptr.vmem [resolvable:$true] %s256_s15 }
   0x8   :  { %66 = vmatpush.msra.mxu0 %v36_v5  ;;  %278 = vmatpush.msra.mxu3 %v204_v20  ;;  %v201_v32 = vld [vmem:[%s490_s5 + $0x20] sm:$0xff]  ;;  %v199_v42 = vld [vmem:[%s490_s5 + $0x10] sm:$0xff]  ;;  %v198_v45 = vld [vmem:[%s490_s5 + $0x8] sm:$0xff]  ;;  %s258_s18 = sshll.u32 %s492_s7, 4  ;;  %s326_s3 = smov 8   ;;  %s259_s18 = int_to_ptr.hbm [resolvable:$true] %s258_s18 }
   0x9   :  { %270 = vmatmul.msk.f32.vlgmr.msra.gmra.mxu0 %vm31_vm0, %v34_v7  ;;  %185 = vmatpush.msra.mxu1 %v162_v8  ;;  %v197_v47 = vld [vmem:[%s490_s5] sm:$0xff] }
   0xa   :  { %274 = vmatmul.msk.f32.vlgmr.msra.gmra.mxu1 %vm31_vm0, %v34_v7  ;;  %221 = vmatpush.msra.mxu2 %v203_v24 }
   0xb   :  { %279 = vmatpush.msra.mxu3 %v203_v24 }
   0xc   :  { %222 = vmatpush.msra.mxu2 %v202_v28 }
   0xd   :  { %280 = vmatpush.msra.mxu3 %v202_v28 }
   0xe   :  { %223 = vmatpush.msra.mxu2 %v201_v32 }
   0xf   :  { %281 = vmatpush.msra.mxu3 %v201_v32 }
  0x10   :  { %224 = vmatpush.msra.mxu2 %v200_v36 }
  0x11   :  { %271 = vmatmul.msk.f32.gmra.mxu0 %vm31_vm0, %v35_v9  ;;  %282 = vmatpush.msra.mxu3 %v200_v36 }
  0x12   :  { %275 = vmatmul.msk.f32.gmra.mxu1 %vm31_vm0, %v35_v9  ;;  %225 = vmatpush.msra.mxu2 %v199_v42 }
  0x13   :  { %283 = vmatpush.msra.mxu3 %v199_v42 }
  0x14   :  { %226 = vmatpush.msra.mxu2 %v198_v45 }
  0x15   :  { %284 = vmatpush.msra.mxu3 %v198_v45 }
  0x16   :  { %227 = vmatpush.msra.mxu2 %v197_v47 }
  0x17   :  { %285 = vmatpush.msra.mxu3 %v197_v47  ;;  %v195_v47 = vld [vmem:[#allocation2] sm:$0xff] }
  0x86   :  { %v68_v11 = vpop.f32.mrf.mxu0 }
  0x87   :  { %v404_v12 = vadd.f32 %v290_v10, %v68_v11  ;;  %v187_v24 = vpop.f32.mrf.mxu1 }
  0x89   :  { %v407_v13 = vmul.f32 0.70710677, %v404_v12 }
  0x8b   :  { %v78_v14 = vmul.f32 %v407_v13, %v407_v13 }
  0x8d   :  { %v411_v15 = vmin.f32 %v78_v14, 16.0 }
  0x8e   :  { %v71_v16 = vpop.f32.mrf.mxu0 }
  0x8f   :  { %v80_v17 = vmul.f32 2.1237322e-06, %v411_v15  ;;  %v91_v18 = vmul.f32 3.8918573e-05, %v411_v15  ;;  %v415_v19 = vadd.f32 %v290_v10, %v71_v16 }
  0x91   :  { %v81_v21 = vadd.f32 0.00028619796, %v80_v17  ;;  %v92_v22 = vadd.f32 0.001143296, %v91_v18  ;;  %v421_v23 = vmul.f32 0.70710677, %v415_v19 }
  0x93   :  { %v82_v25 = vmul.f32 %v81_v21, %v411_v15  ;;  %v93_v26 = vmul.f32 %v92_v22, %v411_v15  ;;  %v118_v27 = vmul.f32 %v421_v23, %v421_v23  ;;  %v291_v22 = vld [vmem:[%s487_s2] ss:$0 sm:$0xff] }
  0x95   :  { %v94_v29 = vadd.f32 0.014752088, %v93_v26  ;;  %v83_v30 = vadd.f32 0.0036580483, %v82_v25  ;;  %v433_v31 = vmin.f32 %v118_v27, 16.0 }
  0x97   :  { %v95_v33 = vmul.f32 %v94_v29, %v411_v15  ;;  %v120_v34 = vmul.f32 2.1237322e-06, %v433_v31  ;;  %v131_v35 = vmul.f32 3.8918573e-05, %v433_v31  ;;  %v84_v38 = vmul.f32 %v83_v30, %v411_v15 }
  0x99   :  { %v96_v37 = vadd.f32 0.112945676, %v95_v33  ;;  %v121_v39 = vadd.f32 0.00028619796, %v120_v34  ;;  %v132_v40 = vadd.f32 0.001143296, %v131_v35  ;;  %v188_v33 = vadd.f32 %v291_v22, %v187_v24 }
  0x9a   :  { %v85_v48 = vadd.f32 0.05243302, %v84_v38 }
  0x9b   :  { %v97_v41 = vmul.f32 %v96_v37, %v411_v15  ;;  %v122_v43 = vmul.f32 %v121_v39, %v433_v31  ;;  %v133_v44 = vmul.f32 %v132_v40, %v433_v31 }
  0x9c   :  { %v86_v54 = vmul.f32 %v85_v48, %v411_v15 }
  0x9d   :  { %v98_v46 = vadd.f32 0.4994258, %v97_v41  ;;  %v134_v49 = vadd.f32 0.014752088, %v133_v44  ;;  %v123_v51 = vadd.f32 0.0036580483, %v122_v43  ;;  %v190_v41 = vpop.f32.mrf.mxu1 }
  0x9e   :  { %v87_v58 = vadd.f32 0.18741608, %v86_v54  ;;  %v191_v44 = vadd.f32 %v291_v22, %v190_v41 }
  0x9f   :  { %v99_v50 = vmul.f32 %v98_v46, %v411_v15  ;;  %v135_v52 = vmul.f32 %v134_v49, %v433_v31  ;;  %v124_v56 = vmul.f32 %v123_v51, %v433_v31 }
  0xa0   :  { %v88_v0 = vmul.f32 %v87_v58, %v411_v15 }
  0xa1   :  { %v100_v53 = vadd.f32 1.0, %v99_v50  ;;  %v136_v55 = vadd.f32 0.112945676, %v135_v52  ;;  %v125_v60 = vadd.f32 0.05243302, %v124_v56 }
  0xa2   :  { %v89_v6 = vadd.f32 1.1283791, %v88_v0  ;;  %v292_v50 = vld [vmem:[%s491_s6] ss:$0 sm:$0xff]  ;;  %s325_s6 = smov 128  }
  0xa3   :  { %293 = vrcp.f32 %v100_v53  ;;  %v137_v57 = vmul.f32 %v136_v55, %v433_v31  ;;  %v126_v3 = vmul.f32 %v125_v60, %v433_v31  ;;  %v112_v5 = vand.u32 2147483648, %v100_v53 }
  0xa4   :  { %v110_v8 = vand.u32 2147483647, %v100_v53  ;;  %vm106_vm2 = vweird.f32 %v100_v53  ;;  %v90_v16 = vmul.f32 %v89_v6, %v407_v13  ;;  %v74_v13 = vmul.f32 0.5, %v404_v12 }
  0xa5   :  { %v138_v59 = vadd.f32 0.4994258, %v137_v57  ;;  %v127_v9 = vadd.f32 0.18741608, %v126_v3  ;;  %v113_v11 = vor.u32 1.1754944e-38, %v112_v5  ;;  %v75_v12 = vmul.f32 0.5, %v415_v19 }
  0xa6   :  { %vm111_vm4 = vcmp.eq.f32.partialorder %v110_v8, 8.507059e+37 }
  0xa7   :  { %v139_v61 = vmul.f32 %v138_v59, %v433_v31  ;;  %v128_v18 = vmul.f32 %v127_v9, %v433_v31 }
  0xa9   :  { %v294_v63 = vpop.eup %293  ;;  %v140_v2 = vadd.f32 1.0, %v139_v61  ;;  %v129_v28 = vadd.f32 1.1283791, %v128_v18 }
  0xaa   :  { %v102_v1 = vmul.f32 %v294_v63, %v100_v53  ;;  %vm107_vm1 = vweird.f32 %v294_v63 }
  0xab   :  { %295 = vrcp.f32 %v140_v2  ;;  %vm108_vm3 = vmor %vm106_vm2, %vm107_vm1  ;;  %v152_v26 = vand.u32 2147483648, %v140_v2  ;;  %v150_v30 = vand.u32 2147483647, %v140_v2  ;;  %vm146_vm6 = vweird.f32 %v140_v2 }
  0xac   :  { %v103_v4 = vsub.f32 1.0, %v102_v1  ;;  %v130_v36 = vmul.f32 %v129_v28, %v421_v23  ;;  %v196_v23 = vld [vmem:[#allocation2 + $0x8] sm:$0xff] }
  0xad   :  { %v153_v31 = vor.u32 1.1754944e-38, %v152_v26  ;;  %vm151_vm8 = vcmp.eq.f32.partialorder %v150_v30, 8.507059e+37 }
  0xae   :  { %v104_v7 = vmul.f32 %v294_v63, %v103_v4 }
  0xb0   :  { %v105_v10 = vadd.f32 %v294_v63, %v104_v7 }
  0xb1   :  { %v296_v14 = vpop.eup %295 }
  0xb2   :  { %v109_v15 = vsel %vm108_vm3, %v294_v63, %v105_v10  ;;  %v142_v20 = vmul.f32 %v296_v14, %v140_v2  ;;  %vm147_vm5 = vweird.f32 %v296_v14 }
  0xb3   :  { %v114_v17 = vsel %vm111_vm4, %v113_v11, %v109_v15  ;;  %vm148_vm7 = vmor %vm146_vm6, %vm147_vm5 }
  0xb4   :  { %v115_v21 = vmul.f32 %v114_v17, %v90_v16  ;;  %v143_v25 = vsub.f32 1.0, %v142_v20 }
  0xb6   :  { %v272_v27 = vclamps-f32 %v115_v21, 1.0  ;;  %v144_v29 = vmul.f32 %v296_v14, %v143_v25 }
  0xb8   :  { %v158_v32 = vadd.f32 1.0, %v272_v27  ;;  %v145_v34 = vadd.f32 %v296_v14, %v144_v29 }
  0xba   :  { %v160_v35 = vmul.f32 %v158_v32, %v74_v13  ;;  %v149_v37 = vsel %vm148_vm7, %v296_v14, %v145_v34 }
  0xbb   :  { %v154_v38 = vsel %vm151_vm8, %v153_v31, %v149_v37 }
  0xbc   :  { %v193_v39 = vmul.f32 %v188_v33, %v160_v35  ;;  %v155_v40 = vmul.f32 %v154_v38, %v130_v36 }
  0xbe   :  { %276 = vmatmul.msk.f32.vlgmr.msra.gmra.mxu2 %vm205_vm9, %v193_v39  ;;  %v273_v42 = vclamps-f32 %v155_v40, 1.0 }
  0xc0   :  { %v159_v43 = vadd.f32 1.0, %v273_v42 }
  0xc2   :  { %v161_v45 = vmul.f32 %v159_v43, %v75_v12 }
  0xc4   :  { %v194_v46 = vmul.f32 %v191_v44, %v161_v45 }
  0xc6   :  { %277 = vmatmul.msk.f32.vlgmr.msra.gmra.mxu3 %vm205_vm9, %v194_v46 }
 0x141   :  { %v229_v48 = vpop.f32.mrf.mxu2 }
 0x142   :  { %v235_v49 = vadd.f32 %v229_v48, %v195_v47 }
 0x144   :  { %237 = vst.msk [vmem:[#allocation2] sm:$0xff] %vm31_vm0, %v235_v49 }
 0x149   :  { %v232_v51 = vpop.f32.mrf.mxu3 }
 0x14a   :  { %v236_v52 = vadd.f32 %v232_v51, %v196_v23 }
 0x14b   :  { %v242_v53 = vld [vmem:[#allocation2] sm:$0xff] }
 0x14c   :  { %v248_v54 = vadd.f32 %v292_v50, %v242_v53  ;;  %238 = vst.msk [vmem:[#allocation2 + $0x8] sm:$0xff] %vm31_vm0, %v236_v52 }
 0x14e   :  { %250 = vst.msk [vmem:[#allocation3] sm:$0xff] %vm31_vm0, %v248_v54 }
 0x153   :  { %v243_v19 = vld [vmem:[#allocation2 + $0x8] sm:$0xff] }
 0x154   :  { %v249_v55 = vadd.f32 %v292_v50, %v243_v19 }
 0x156   :  { %251 = vst.msk [vmem:[#allocation3 + $0x8] sm:$0xff] %vm31_vm0, %v249_v55 }
 0x157   :  { %264 = dma.vmem_to_hbm [thread:$0]  %s257_s15, 256, %s259_s18, [#allocation4], %s325_s6, %s325_s6, %s326_s3  }
 0x158   :  { %321 = dma.done.wait [#allocation4], 256  }
 0x159   :  { %322 = vsyncadd [#allocation4], 4294967040 }
 0x15a   :  { %269 = vsyncpa [#allocation4], 1 }

</bundles_post_ra>
